<compile_context>
chip_gen: v7x
topology: tpu7x:2x2x1
jax: 0.10.0
libtpu: 0.0.40
codegen_flags: <defaults>
</compile_context>

<pallas_src>
import functools

import jax
import jax.numpy as jnp
from jax import lax
from jax.experimental import pallas as pl
from jax.experimental.pallas import tpu as pltpu


def _round_up(x, m):
    return (x + m - 1) // m * m


def _row_tile(n_pad):
    # largest convenient row tile that divides n_pad (n_pad is a multiple of 8)
    for cand in (256, 128, 64, 32, 16, 8):
        if n_pad >= cand and n_pad % cand == 0:
            return cand
    return n_pad


# ---------------------------------------------------------------------------
# One-shot, row-tiled adjacency normalization: D^-1/2 (mask_inf(A) + I) D^-1/2
# ---------------------------------------------------------------------------
def _masked_plus_identity(a, row0):
    """Mask +inf -> 0 and add the identity block for global rows [row0, row0+tn)."""
    tn, n = a.shape
    a = jnp.where(a == jnp.inf, jnp.zeros_like(a), a)
    grow = row0 + lax.broadcasted_iota(jnp.int32, (tn, 1), 0)
    col = lax.broadcasted_iota(jnp.int32, (1, n), 1)
    return a + (grow == col).astype(a.dtype)


def _degree_kernel(adj_ref, d_ref):
    tn = adj_ref.shape[0]
    a = _masked_plus_identity(adj_ref[...], pl.program_id(0) * tn)
    d = lax.rsqrt(jnp.sum(a, axis=1, keepdims=True))          # EUP rsqrt (free slot)
    d_ref[...] = jnp.where(jnp.isinf(d), jnp.zeros_like(d), d)


def _scale_kernel(adj_ref, dcol_ref, drow_ref, o_ref):
    tn = adj_ref.shape[0]
    a = _masked_plus_identity(adj_ref[...], pl.program_id(0) * tn)
    o_ref[...] = dcol_ref[...] * a * drow_ref[...]             # d_i * a_ij * d_j


def _normalize_adj(adj, n_pad):
    """Symmetric normalization in f32, row-tiled so large N fits every VMEM size."""
    n = adj.shape[0]
    adj = adj.astype(jnp.float32)
    if n_pad != n:
        # Zero padding is inert: padded columns scale to 0 for real rows and
        # padded output rows are sliced off by the caller.
        adj = jnp.pad(adj, ((0, n_pad - n), (0, n_pad - n)))
    tn = _row_tile(n_pad)
    grid = (n_pad // tn,)
    params = pltpu.CompilerParams(dimension_semantics=("parallel",),
                                  vmem_limit_bytes=32 * 1024 * 1024)

    d = pl.pallas_call(
        _degree_kernel,
        out_shape=jax.ShapeDtypeStruct((n_pad, 1), jnp.float32),
        grid=grid,
        in_specs=[pl.BlockSpec((tn, n_pad), lambda i: (i, 0))],
        out_specs=pl.BlockSpec((tn, 1), lambda i: (i, 0)),
        compiler_params=params,
    )(adj)

    d_row = d.reshape(1, n_pad)                                # one-time XLA transpose
    return pl.pallas_call(
        _scale_kernel,
        out_shape=jax.ShapeDtypeStruct((n_pad, n_pad), jnp.float32),
        grid=grid,
        in_specs=[pl.BlockSpec((tn, n_pad), lambda i: (i, 0)),
                  pl.BlockSpec((tn, 1), lambda i: (i, 0)),
                  pl.BlockSpec((1, n_pad), lambda i: (0, 0))],
        out_specs=pl.BlockSpec((tn, n_pad), lambda i: (i, 0)),
        compiler_params=params,
    )(adj, d, d_row)


# ---------------------------------------------------------------------------
# Main GCN kernel, node-major layout (N_pad, TB, F): one wide adjacency matmul
# ---------------------------------------------------------------------------
def _gcn_kernel(x_ref, adjn_ref, w_ref, b_ref, o_ref, mid_ref, *, adj_first):
    n, tb, f_in = x_ref.shape
    f_pad = w_ref.shape[1]
    f32 = jnp.float32

    if adj_first:
        # ---- (adj_n @ x) @ W : cheaper when F_in < F_pad ---------------------
        for t in range(tb):                       # assemble wide operand (N, TB*F_in)
            mid_ref[:, t * f_in:(t + 1) * f_in] = x_ref[:, t, :]
        h = jnp.dot(adjn_ref[...], mid_ref[...],  # ONE wide adjacency matmul
                    preferred_element_type=f32)
        mid_ref[...] = h.astype(mid_ref.dtype)    # stage in bf16 scratch
        bias = jnp.broadcast_to(b_ref[:, :f_pad], (n, f_pad))   # hoisted broadcast
        for t in range(tb):
            out_t = jnp.dot(mid_ref[:, t * f_in:(t + 1) * f_in], w_ref[...],
                            preferred_element_type=f32)
            o_ref[:, t, :] = (out_t + bias).astype(o_ref.dtype)
    else:
        # ---- adj_n @ (x @ W) : cheaper when F_pad <= F_in --------------------
        x2 = x_ref[...].reshape(n * tb, f_in)     # batch folded into MXU M dim
        sup = jnp.dot(x2, w_ref[...], preferred_element_type=f32)
        sup = sup.reshape(n, tb, f_pad)
        for t in range(tb):                       # assemble wide operand (N, TB*F_pad)
            mid_ref[:, t * f_pad:(t + 1) * f_pad] = sup[:, t, :].astype(mid_ref.dtype)
        out = jnp.dot(adjn_ref[...], mid_ref[...],  # ONE wide adjacency matmul
                      preferred_element_type=f32) + b_ref[...]   # pre-tiled bias, 1 add
        for t in range(tb):
            o_ref[:, t, :] = out[:, t * f_pad:(t + 1) * f_pad].astype(o_ref.dtype)


def graph_convolution(x, adj, weight, bias=None, *, batch_tile=8):
    """x: [B, N, F_in], adj: [N, N], weight: [F_in, F_out], bias: [F_out] or None.

    Returns f32 [B, N, F_out] = adj_norm @ (x @ W) + bias  (per batch element).
    """
    B, N, F_in = x.shape
    F_out = weight.shape[1]

    N_pad = _round_up(N, 8)            # sublane-clean folds / reshapes
    F_pad = _round_up(F_out, 128)      # lane-dense output stores

    # Batch tile: must be a multiple of 8 OR cover the whole (padded) batch so
    # the (TB, F) trailing block dims satisfy the (8, 128) rule.
    TB = min(batch_tile, B)
    if TB % 8 != 0:
        TB = B                         # single grid step
        # NOTE(v7x): with B < 8 the grid collapses to one step and the second
        # TensorCore idles; splitting further would violate the block-shape rule.
    B_pad = _round_up(B, TB)

    # Batch-invariant normalization (f32, one-shot), then bf16 for the MXU.
    adj_n = _normalize_adj(adj, N_pad).astype(jnp.bfloat16)

    # bf16 MXU operands; bias stays f32 for the elementwise add.
    w_p = jnp.pad(weight.astype(jnp.float32),
                  ((0, 0), (0, F_pad - F_out))).astype(jnp.bfloat16)
    if bias is None:
        bias = jnp.zeros((F_out,), jnp.float32)
    b_p = jnp.pad(bias.astype(jnp.float32), (0, F_pad - F_out)).reshape(1, F_pad)
    b_tiled = jnp.tile(b_p, (1, TB))                     # (1, TB*F_pad), one add/step

    # Node-major layout (N_pad, B_pad, F_in) so a batch tile fuses into lanes.
    x_p = x
    if N_pad != N or B_pad != B:
        x_p = jnp.pad(x_p, ((0, B_pad - B), (0, N_pad - N), (0, 0)))
    x_t = jnp.transpose(x_p, (1, 0, 2)).astype(jnp.bfloat16)

    # Multiplication order: contract the cheaper feature width through adj_n.
    adj_first = F_in < F_pad
    F_mid = F_in if adj_first else F_pad

    # VMEM budget: double-buffered streamed tiles + scratch + invariants
    # (invariants counted double-buffered in case Buffered(1) is unavailable).
    est = (2 * TB * N_pad * (2 * F_in + 4 * F_pad)
           + 2 * N_pad * TB * F_mid
           + 2 * (2 * N_pad * N_pad + 2 * F_in * F_pad + 4 * TB * F_pad))
    try:
        cap = int(pltpu.get_tpu_info().vmem_capacity_bytes) * 3 // 4
    except Exception:
        cap = 48 * 1024 * 1024
    vmem_limit = int(min(max(2 * est, 32 * 1024 * 1024), max(cap, 32 * 1024 * 1024)))

    kernel = functools.partial(_gcn_kernel, adj_first=adj_first)
    grid = (B_pad // TB,)

    def _call(single_buffer_invariants):
        inv = {"pipeline_mode": pl.Buffered(1)} if single_buffer_invariants else {}
        return pl.pallas_call(
            kernel,
            out_shape=jax.ShapeDtypeStruct((N_pad, B_pad, F_pad), jnp.float32),
            grid=grid,
            in_specs=[
                pl.BlockSpec((N_pad, TB, F_in), lambda b: (0, b, 0)),      # x tile
                pl.BlockSpec((N_pad, N_pad), lambda b: (0, 0), **inv),     # adj_n (invariant)
                pl.BlockSpec((F_in, F_pad), lambda b: (0, 0), **inv),      # weight (invariant)
                pl.BlockSpec((1, TB * F_pad), lambda b: (0, 0), **inv),    # tiled bias (invariant)
            ],
            out_specs=pl.BlockSpec((N_pad, TB, F_pad), lambda b: (0, b, 0)),
            scratch_shapes=[pltpu.VMEM((N_pad, TB * F_mid), jnp.bfloat16)],
            compiler_params=pltpu.CompilerParams(
                dimension_semantics=("parallel",),       # no cross-step accumulator
                vmem_limit_bytes=vmem_limit),
        )(x_t, adj_n, w_p, b_tiled)

    try:
        out = _call(True)        # single-buffer the grid-invariant inputs (saves VMEM)
    except Exception:
        out = _call(False)       # fallback: default double buffering

    return jnp.transpose(out, (1, 0, 2))[:B, :N, :F_out]


# ---------------------------------------------------------------------------
# Pure-JAX reference (f32)
# ---------------------------------------------------------------------------
def _reference(x, adj, weight, bias):
    adj = jnp.where(adj == jnp.inf, 0.0, adj)
    adj = adj + jnp.eye(adj.shape[0], dtype=adj.dtype)
    rowsum = adj.sum(1)
    d = rowsum ** -0.5
    d = jnp.where(jnp.isinf(d), 0.0, d)
    adj_n = d[:, None] * adj * d[None, :]
    return jnp.einsum("ij,bjf->bif", adj_n, x @ weight) + bias


if __name__ == "__main__":
    key = jax.random.PRNGKey(0)

    def run_case(B, N, F_in, F_out):
        kx, ka, kw = jax.random.split(jax.random.fold_in(key, B * 1000 + N), 3)
        x = jax.random.normal(kx, (B, N, F_in), dtype=jnp.float32)

        # adjacency with +inf sentinel entries (exercises the inf-masking path)
        adj = jax.random.uniform(ka, (N, N), dtype=jnp.float32)
        adj = adj.at[0, 3].set(jnp.inf).at[N - 1, 1].set(jnp.inf)

        # deterministic xavier-uniform weight, zero bias (matches reset_parameters)
        limit = (6.0 / (F_in + F_out)) ** 0.5
        weight = jax.random.uniform(kw, (F_in, F_out), dtype=jnp.float32,
                                    minval=-limit, maxval=limit)
        bias = jnp.zeros((F_out,), dtype=jnp.float32)

        out = jax.block_until_ready(graph_convolution(x, adj, weight, bias))
        ref = _reference(x, adj, weight, bias)
        assert out.shape == (B, N, F_out)
        # bf16 MXU operands -> compare against the f32 reference at bf16 tolerance
        err = float(jnp.max(jnp.abs(out - ref)))
        assert jnp.allclose(out, ref, atol=5e-2, rtol=5e-2), err

    # small module-sized case: F_in < 128 -> (adj_n @ x) @ W ordering
    run_case(B=2, N=8, F_in=32, F_out=16)
    # wider case: F_in >= F_pad -> adj_n @ (x @ W) ordering; exercises N/B padding
    # and a multi-step "parallel" batch-tile grid (TB=8, grid=2)
    run_case(B=12, N=10, F_in=256, F_out=128)

    print("KERNEL_OK")
</pallas_src>

<mosaic_0001>
module attributes {stable_mosaic.version = 11 : i64} {
  func.func @_degree_kernel(%arg0: i32, %arg1: memref<8x8xf32, #tpu.memory_space<vmem>>, %arg2: memref<8x1xf32, #tpu.memory_space<vmem>>) attributes {dimension_semantics = [#tpu.dimension_semantics<parallel>], iteration_bounds = array<i64: 1>, scalar_prefetch = 0 : i64, scratch_operands = 0 : i64, tpu.core_type = #tpu.core_type<tc>, window_params = [{transform_indices = @transform_0, window_bounds = array<i64: 8, 8>}, {transform_indices = @transform_1, window_bounds = array<i64: 8, 1>}]} {
    %c0 = arith.constant 0 : index
    %c0_0 = arith.constant 0 : index
    %0 = vector.load %arg1[%c0, %c0_0] : memref<8x8xf32, #tpu.memory_space<vmem>>, vector<8x8xf32>
    %c8_i32 = arith.constant 8 : i32
    %1 = arith.muli %arg0, %c8_i32 : i32
    %cst = arith.constant 0x7F800000 : f32
    %2 = vector.broadcast %cst : f32 to vector<8x8xf32>
    %3 = arith.cmpf oeq, %0, %2 : vector<8x8xf32>
    %cst_1 = arith.constant 0.000000e+00 : f32
    %4 = vector.broadcast %cst_1 : f32 to vector<8x8xf32>
    %5 = arith.select %3, %4, %0 : vector<8x8xi1>, vector<8x8xf32>
    %6 = tpu.iota {dimensions = array<i32: 0>} : vector<8x1xi32>
    %7 = vector.broadcast %1 : i32 to vector<8x1xi32>
    %8 = arith.addi %7, %6 : vector<8x1xi32>
    %9 = tpu.iota {dimensions = array<i32: 1>} : vector<1x8xi32>
    %10 = vector.broadcast %8 : vector<8x1xi32> to vector<8x8xi32>
    %11 = vector.broadcast %9 : vector<1x8xi32> to vector<8x8xi32>
    %12 = arith.cmpi eq, %10, %11 : vector<8x8xi32>
    %13 = arith.extui %12 : vector<8x8xi1> to vector<8x8xi32>
    %14 = arith.sitofp %13 : vector<8x8xi32> to vector<8x8xf32>
    %15 = arith.addf %5, %14 : vector<8x8xf32>
    %cst_2 = arith.constant dense<0.000000e+00> : vector<8xf32>
    %16 = vector.multi_reduction <add>, %15, %cst_2 [1] : vector<8x8xf32> to vector<8xf32>
    %17 = vector.shape_cast %16 : vector<8xf32> to vector<8x1xf32>
    %18 = math.rsqrt %17 : vector<8x1xf32>
    %19 = math.absf %18 : vector<8x1xf32>
    %cst_3 = arith.constant 0x7F800000 : f32
    %20 = vector.broadcast %cst_3 : f32 to vector<8x1xf32>
    %21 = arith.cmpf oeq, %19, %20 : vector<8x1xf32>
    %cst_4 = arith.constant 0.000000e+00 : f32
    %22 = vector.broadcast %cst_4 : f32 to vector<8x1xf32>
    %23 = arith.select %21, %22, %18 : vector<8x1xi1>, vector<8x1xf32>
    %c0_5 = arith.constant 0 : index
    %c0_6 = arith.constant 0 : index
    %24 = vector.load %arg2[%c0_5, %c0_6] : memref<8x1xf32, #tpu.memory_space<vmem>>, vector<8x1xf32>
    tpu.vector_store %arg2[%c0_5, %c0_6], %23 {strides = array<i32>} : memref<8x1xf32, #tpu.memory_space<vmem>>, vector<8x1xf32>,
    return
  }
  func.func @transform_0(%arg0: i32) -> (i32, i32) {
    %c0_i32 = arith.constant 0 : i32
    %c0_i32_0 = arith.constant 0 : i32
    return %arg0, %c0_i32 : i32, i32
  }
  func.func @transform_1(%arg0: i32) -> (i32, i32) {
    %c0_i32 = arith.constant 0 : i32
    %c0_i32_0 = arith.constant 0 : i32
    return %arg0, %c0_i32 : i32, i32
  }
}

</mosaic_0001>

<bundles_post_ra>
// kernel: tpu_custom_call.1
= control target key start
LH: loop header
LB: loop body
LE: loop exit
PB: predicated region body
PF: predicated region fallthrough
CT: control target
= control target key end

     0   :  { %6 = vsyncpa [#allocation3], 0  ;;  %s78_s6 = smov [#allocation2]   ;;  %s105_s0 = inlined_call_operand.hbm [shape: f32[8,8], index: 0, kind: input, shape index: {}]   ;;  %s106_s1 = inlined_call_operand.vmem [shape: f32[8,1], index: 1, kind: output, shape index: {}]  }
   0x1   :  { %s13_s7 = sshll.u32 %s78_s6, 4  ;;  %s54_s10 = scalar_lea.hbm %s105_s0, 128  ;;  %s14_s7 = int_to_ptr.vmem [resolvable:$true] %s13_s7 }
   0x2   :  { %p55_p0 = scmp.ne.s32.totalorder %s105_s0, %s54_s10  ;;  %p58_p1 = scmp.lt.u32.totalorder %s54_s10, %s105_s0 }
   0x4   :  { %p60_p2 = pnand %p58_p1, %p55_p0 }
   0x6   :  { %63 = shalt.err (!%p60_p2)
}
   0x7   :  { %s64_s15 = scalar_lea.vmem %s14_s7, 128  ;;  %p69_p4 = scmp.lt.s32.totalorder %s14_s7, %s14_s7 }
   0x8   :  { %p65_p3 = scmp.ne.s32.totalorder %s14_s7, %s64_s15  ;;  %p70_p5 = scmp.lt.s32.totalorder %s64_s15, %s64_s15 }
   0xa   :  { %p71_p6 = por %p70_p5, %p69_p4 }
   0xc   :  { %p72_p7 = pnand %p71_p6, %p65_p3 }
   0xe   :  { %75 = shalt.err (!%p72_p7)
}
   0xf   :  { %16 = dma.hbm_to_vmem [thread:$0]  %s105_s0, 128, %s14_s7, [#allocation3]  }
  0x10   :  { %76 = dma.done.wait [#allocation3], 128  }
  0x11   :  { %77 = vsyncadd [#allocation3], 4294967168  ;;  %v24_v0 = vlaneseq  ;;  %v20_v3 = vld [vmem:[#allocation2] sm:$0xff]  ;;  %v79_v4 = vmov 0.0   ;;  %vm34_vm2 = vcmask 64512   ;;  %vm42_vm3 = vcmask 7168  }
  0x12   :  { %vm22_vm1 = vcmp.eq.f32.partialorder %v20_v3, inf }
  0x13   :  { %v25_v1 = vshrl.u32 %v24_v0, 7  ;;  %v29_v2 = vand.u32 127, %v24_v0  ;;  %v23_v6 = vsel %vm22_vm1, 0.0, %v20_v3 }
  0x15   :  { %vm30_vm0 = vcmp.eq.s32.totalorder %v25_v1, %v29_v2 }
  0x16   :  { %v49_v5 = vsel %vm30_vm0, 1.0, %v79_v4 }
  0x17   :  { %v33_v7 = vadd.f32 %v49_v5, %v23_v6 }
  0x19   :  { %v35_v8 = vsel %vm34_vm2, %v33_v7, 0.0 }
  0x1a   :  { %36 = vadd.xlane.f32.xlu0 %v35_v8 }
  0xa7   :  { %v37_v9 = vpop.xlane.xlu0 %36 }
  0xa8   :  { %52 = vrsqrt.f32 %v37_v9 }
  0xb2   :  { %v53_v10 = vpop.eup %52 }
  0xb3   :  { %v39_v11 = vand.u32 2147483647, %v53_v10 }
  0xb5   :  { %vm40_vm4 = vcmp.eq.f32.partialorder %v39_v11, inf }
  0xb6   :  { %v41_v12 = vsel %vm40_vm4, 0.0, %v53_v10 }
  0xb7   :  { %43 = vst.msk [vmem:[%s106_s1] sm:$0xff] %vm42_vm3, %v41_v12 }
  0xb8   :  { %48 = vsyncpa [#allocation3], 1 }

</bundles_post_ra>
